<compile_context>
chip_gen: v5e
topology: v5e:2x2
jax: 0.10.0
libtpu: 0.0.40
codegen_flags: <defaults>
</compile_context>

<pallas_src>
import jax
import jax.numpy as jnp
from jax.experimental import pallas as pl
from jax.experimental.pallas import tpu as pltpu

ACTION_SPACE = 4          # consts.action_space (synthetic, small)
H1 = 64
H2 = 32


def duelnet_kernel(s_ref, pi_ref, w1_ref, b1_ref,
                   w2a_ref, w2b_ref, b2_ref, w3_ref, b3_ref, out_ref):
    # s_ref: (bt, 16)  pi_ref: (bt, 4)   -- batch-major blocks straight from HBM
    # out_ref: (1, bt)                   -- batch along lanes (lane-dense store)
    # Upcast (no-op for f32 inputs) and transpose in-kernel: the transpose feeds
    # the MXU directly (same A @ B.T pattern as flash attention's q @ k.T).
    s_f32 = s_ref[...].astype(jnp.float32)      # (bt, 16)
    pi_f32 = pi_ref[...].astype(jnp.float32)    # (bt, 4)

    # fc1 + relu : (64, 16) @ (16, bt) -> (64, bt)
    x = jnp.dot(w1_ref[...], s_f32.T, preferred_element_type=jnp.float32) + b1_ref[...]
    x = jnp.maximum(x, 0.0)

    # fc2 on concat([x, pi]) == W2a @ x + W2b @ pi : -> (32, bt)
    h = (jnp.dot(w2a_ref[...], x, preferred_element_type=jnp.float32)
         + jnp.dot(w2b_ref[...], pi_f32.T, preferred_element_type=jnp.float32)
         + b2_ref[...])
    h = jnp.maximum(h, 0.0)

    # fc3 (no activation) : (1, 32) @ (32, bt) -> (1, bt), lane-dense store.
    out_ref[...] = (jnp.dot(w3_ref[...], h, preferred_element_type=jnp.float32)
                    + b3_ref[...])


def duelnet_forward(s, pi, params, *, block_b=8192):
    """s: (B, A, A) or (B, A*A); pi: (B, A) or (B, 1, A). Returns (B, 1) f32.

    Inputs may be float32 or bfloat16 (bf16 halves HBM traffic; math stays f32).
    """
    A = ACTION_SPACE
    K1 = A * A

    s2 = s.reshape(-1, K1)        # free reshapes; keep the caller's dtype
    pi2 = pi.reshape(-1, A)
    B = s2.shape[0]
    assert pi2.shape[0] == B

    # Batch tile: multiple of 128 (lane width), no larger than needed.
    block_b = max(128, (int(block_b) // 128) * 128)
    bt = min(block_b, pl.cdiv(B, 128) * 128)
    n_tiles = pl.cdiv(B, bt)      # last block may be partial -> Pallas masks it

    w1, b1, w2, b2, w3, b3 = (params[k] for k in
                              ("w1", "b1", "w2", "b2", "w3", "b3"))
    w1_t = w1.T                                  # (64, 16)
    w2a_t = w2[:H1].T                            # (32, 64)  acts on relu(fc1(s))
    w2b_t = w2[H1:].T                            # (32, 4)   acts on pi
    w3_t = w3.T                                  # (1, 32)
    b1c = b1.reshape(H1, 1)
    b2c = b2.reshape(H2, 1)
    b3c = b3.reshape(1, 1)

    # Weights/biases resident across all grid steps (block index always (0,0)).
    resident = lambda shape: pl.BlockSpec(shape, lambda i: (0, 0))

    in_itemsize = jnp.dtype(s2.dtype).itemsize
    cost = pl.CostEstimate(flops=6464 * B, transcendentals=0,
                           bytes_accessed=B * ((K1 + A) * in_itemsize + 4))

    out = pl.pallas_call(
        duelnet_kernel,
        out_shape=jax.ShapeDtypeStruct((1, B), jnp.float32),
        grid=(n_tiles,),
        in_specs=[
            pl.BlockSpec((bt, K1), lambda i: (i, 0)),   # s  (batch-major block)
            pl.BlockSpec((bt, A), lambda i: (i, 0)),    # pi (batch-major block)
            resident((H1, K1)),        # w1_t
            resident((H1, 1)),         # b1
            resident((H2, H1)),        # w2a_t
            resident((H2, A)),         # w2b_t
            resident((H2, 1)),         # b2
            resident((1, H2)),         # w3_t
            resident((1, 1)),          # b3
        ],
        out_specs=pl.BlockSpec((1, bt), lambda i: (0, i)),   # lane-dense output
        compiler_params=pltpu.CompilerParams(
            dimension_semantics=("parallel",),
            vmem_limit_bytes=48 * 1024 * 1024),
        cost_estimate=cost,
    )(s2, pi2, w1_t, b1c, w2a_t, w2b_t, b2c, w3_t, b3c)

    return out.reshape(B, 1)       # (1,B) -> (B,1) is a free, contiguous reshape


def init_params(key):
    """Deterministic xavier-uniform init matching DuelNet.__init__ shapes."""
    A = ACTION_SPACE

    def xavier(key, fan_in, fan_out):
        limit = (6.0 / (fan_in + fan_out)) ** 0.5
        return jax.random.uniform(key, (fan_in, fan_out), jnp.float32,
                                  minval=-limit, maxval=limit)

    k1, k2, k3, k4, k5, k6 = jax.random.split(key, 6)
    unif = lambda k, n: jax.random.uniform(k, (n,), jnp.float32, minval=-0.1, maxval=0.1)
    return {
        "w1": xavier(k1, A * A, H1),   "b1": unif(k4, H1),
        "w2": xavier(k2, H1 + A, H2),  "b2": unif(k5, H2),
        "w3": xavier(k3, H2, 1),       "b3": unif(k6, 1),
    }


def reference_forward(s, pi, params):
    """Pure-JAX reference mirroring the PyTorch forward."""
    A = ACTION_SPACE
    s = s.reshape(-1, A * A)
    pi = pi.reshape(-1, A)
    x = jnp.maximum(s @ params["w1"] + params["b1"], 0.0)
    x = jnp.concatenate([x, pi], axis=1)
    x = jnp.maximum(x @ params["w2"] + params["b2"], 0.0)
    return x @ params["w3"] + params["b3"]


if __name__ == "__main__":
    key = jax.random.PRNGKey(0)
    kp, ks, kpi, ks2, kpi2, ks3, kpi3 = jax.random.split(key, 7)

    A = ACTION_SPACE
    params = init_params(kp)

    # Small deterministic test: B=8 (single, partial 128-lane tile).
    B = 8
    s = jax.random.normal(ks, (B, A, A), jnp.float32)     # state grid
    pi = jax.random.normal(kpi, (B, A), jnp.float32)       # action vector
    out = jax.block_until_ready(duelnet_forward(s, pi, params))
    ref = reference_forward(s, pi, params)
    assert out.shape == (B, 1)
    assert jnp.allclose(out, ref, atol=5e-5, rtol=5e-5), "mismatch vs JAX reference"

    # Multi-tile grid + non-divisible (masked) final block, no padding pass.
    B2 = 300
    s2 = jax.random.normal(ks2, (B2, A, A), jnp.float32)
    pi2 = jax.random.normal(kpi2, (B2, A), jnp.float32)
    out2 = jax.block_until_ready(duelnet_forward(s2, pi2, params, block_b=128))
    ref2 = reference_forward(s2, pi2, params)
    assert out2.shape == (B2, 1)
    assert jnp.allclose(out2, ref2, atol=5e-5, rtol=5e-5), "mismatch (tiled path)"

    # bf16 input path (halves HBM traffic); looser tolerance per bf16 rounding.
    B3 = 512
    s3 = jax.random.normal(ks3, (B3, A, A), jnp.float32).astype(jnp.bfloat16)
    pi3 = jax.random.normal(kpi3, (B3, A), jnp.float32).astype(jnp.bfloat16)
    out3 = jax.block_until_ready(duelnet_forward(s3, pi3, params))
    ref3 = reference_forward(s3, pi3, params)
    assert out3.shape == (B3, 1)
    assert jnp.allclose(out3, ref3, atol=1e-2, rtol=1e-2), "mismatch (bf16 path)"

    print("KERNEL_OK")
</pallas_src>

<mosaic_0001>
module attributes {stable_mosaic.version = 11 : i64} {
  func.func @duelnet_kernel(%arg0: i32, %arg1: memref<128x16xf32, #tpu.memory_space<vmem>>, %arg2: memref<128x4xf32, #tpu.memory_space<vmem>>, %arg3: memref<64x16xf32, #tpu.memory_space<vmem>>, %arg4: memref<64x1xf32, #tpu.memory_space<vmem>>, %arg5: memref<32x64xf32, #tpu.memory_space<vmem>>, %arg6: memref<32x4xf32, #tpu.memory_space<vmem>>, %arg7: memref<32x1xf32, #tpu.memory_space<vmem>>, %arg8: memref<1x32xf32, #tpu.memory_space<vmem>>, %arg9: memref<1x1xf32, #tpu.memory_space<vmem>>, %arg10: memref<1x128xf32, #tpu.memory_space<vmem>>) attributes {dimension_semantics = [#tpu.dimension_semantics<parallel>], iteration_bounds = array<i64: 1>, scalar_prefetch = 0 : i64, scratch_operands = 0 : i64, tpu.core_type = #tpu.core_type<tc>, window_params = [{transform_indices = @transform_0, window_bounds = array<i64: 128, 16>}, {transform_indices = @transform_1, window_bounds = array<i64: 128, 4>}, {pipeline_mode = #tpu.pipeline_mode<synchronous>, transform_indices = @transform_2, window_bounds = array<i64: 64, 16>}, {pipeline_mode = #tpu.pipeline_mode<synchronous>, transform_indices = @transform_3, window_bounds = array<i64: 64, 1>}, {pipeline_mode = #tpu.pipeline_mode<synchronous>, transform_indices = @transform_4, window_bounds = array<i64: 32, 64>}, {pipeline_mode = #tpu.pipeline_mode<synchronous>, transform_indices = @transform_5, window_bounds = array<i64: 32, 4>}, {pipeline_mode = #tpu.pipeline_mode<synchronous>, transform_indices = @transform_6, window_bounds = array<i64: 32, 1>}, {pipeline_mode = #tpu.pipeline_mode<synchronous>, transform_indices = @transform_7, window_bounds = array<i64: 1, 32>}, {pipeline_mode = #tpu.pipeline_mode<synchronous>, transform_indices = @transform_8, window_bounds = array<i64: 1, 1>}, {transform_indices = @transform_9, window_bounds = array<i64: 1, 128>}]} {
    %c0 = arith.constant 0 : index
    %c0_0 = arith.constant 0 : index
    %0 = vector.load %arg1[%c0, %c0_0] : memref<128x16xf32, #tpu.memory_space<vmem>>, vector<128x16xf32>
    %c0_1 = arith.constant 0 : index
    %c0_2 = arith.constant 0 : index
    %1 = vector.load %arg2[%c0_1, %c0_2] : memref<128x4xf32, #tpu.memory_space<vmem>>, vector<128x4xf32>
    %c0_3 = arith.constant 0 : index
    %c0_4 = arith.constant 0 : index
    %2 = vector.load %arg3[%c0_3, %c0_4] : memref<64x16xf32, #tpu.memory_space<vmem>>, vector<64x16xf32>
    %3 = tpu.transpose %0, [1, 0] : vector<128x16xf32> -> vector<16x128xf32>
    %cst = arith.constant dense<0.000000e+00> : vector<64x128xf32>
    %4 = tpu.matmul %2, %3, %cst {dimension_numbers = #tpu.dot_dimension_numbers<[1], [0], [0], [1], [0, 0, 1, 1], [], []>} : vector<64x16xf32>, vector<16x128xf32>, vector<64x128xf32> -> vector<64x128xf32>
    %c0_5 = arith.constant 0 : index
    %c0_6 = arith.constant 0 : index
    %5 = vector.load %arg4[%c0_5, %c0_6] : memref<64x1xf32, #tpu.memory_space<vmem>>, vector<64x1xf32>
    %6 = vector.broadcast %5 : vector<64x1xf32> to vector<64x128xf32>
    %7 = arith.addf %4, %6 : vector<64x128xf32>
    %cst_7 = arith.constant 0.000000e+00 : f32
    %8 = vector.broadcast %cst_7 : f32 to vector<64x128xf32>
    %9 = arith.maximumf %7, %8 : vector<64x128xf32>
    %c0_8 = arith.constant 0 : index
    %c0_9 = arith.constant 0 : index
    %10 = vector.load %arg5[%c0_8, %c0_9] : memref<32x64xf32, #tpu.memory_space<vmem>>, vector<32x64xf32>
    %cst_10 = arith.constant dense<0.000000e+00> : vector<32x128xf32>
    %11 = tpu.matmul %10, %9, %cst_10 {dimension_numbers = #tpu.dot_dimension_numbers<[1], [0], [0], [1], [0, 0, 1, 1], [], []>} : vector<32x64xf32>, vector<64x128xf32>, vector<32x128xf32> -> vector<32x128xf32>
    %c0_11 = arith.constant 0 : index
    %c0_12 = arith.constant 0 : index
    %12 = vector.load %arg6[%c0_11, %c0_12] : memref<32x4xf32, #tpu.memory_space<vmem>>, vector<32x4xf32>
    %13 = tpu.transpose %1, [1, 0] : vector<128x4xf32> -> vector<4x128xf32>
    %cst_13 = arith.constant dense<0.000000e+00> : vector<32x128xf32>
    %14 = tpu.matmul %12, %13, %cst_13 {dimension_numbers = #tpu.dot_dimension_numbers<[1], [0], [0], [1], [0, 0, 1, 1], [], []>} : vector<32x4xf32>, vector<4x128xf32>, vector<32x128xf32> -> vector<32x128xf32>
    %15 = arith.addf %11, %14 : vector<32x128xf32>
    %c0_14 = arith.constant 0 : index
    %c0_15 = arith.constant 0 : index
    %16 = vector.load %arg7[%c0_14, %c0_15] : memref<32x1xf32, #tpu.memory_space<vmem>>, vector<32x1xf32>
    %17 = vector.broadcast %16 : vector<32x1xf32> to vector<32x128xf32>
    %18 = arith.addf %15, %17 : vector<32x128xf32>
    %cst_16 = arith.constant 0.000000e+00 : f32
    %19 = vector.broadcast %cst_16 : f32 to vector<32x128xf32>
    %20 = arith.maximumf %18, %19 : vector<32x128xf32>
    %c0_17 = arith.constant 0 : index
    %c0_18 = arith.constant 0 : index
    %21 = vector.load %arg8[%c0_17, %c0_18] : memref<1x32xf32, #tpu.memory_space<vmem>>, vector<1x32xf32>
    %cst_19 = arith.constant dense<0.000000e+00> : vector<1x128xf32>
    %22 = tpu.matmul %21, %20, %cst_19 {dimension_numbers = #tpu.dot_dimension_numbers<[1], [0], [0], [1], [0, 0, 1, 1], [], []>} : vector<1x32xf32>, vector<32x128xf32>, vector<1x128xf32> -> vector<1x128xf32>
    %c0_20 = arith.constant 0 : index
    %c0_21 = arith.constant 0 : index
    %23 = vector.load %arg9[%c0_20, %c0_21] : memref<1x1xf32, #tpu.memory_space<vmem>>, vector<1x1xf32>
    %24 = vector.broadcast %23 : vector<1x1xf32> to vector<1x128xf32>
    %25 = arith.addf %22, %24 : vector<1x128xf32>
    %c0_22 = arith.constant 0 : index
    %c0_23 = arith.constant 0 : index
    %26 = vector.load %arg10[%c0_22, %c0_23] : memref<1x128xf32, #tpu.memory_space<vmem>>, vector<1x128xf32>
    tpu.vector_store %arg10[%c0_22, %c0_23], %25 {strides = array<i32>} : memref<1x128xf32, #tpu.memory_space<vmem>>, vector<1x128xf32>,
    return
  }
  func.func @transform_0(%arg0: i32) -> (i32, i32) {
    %c0_i32 = arith.constant 0 : i32
    %c0_i32_0 = arith.constant 0 : i32
    return %arg0, %c0_i32 : i32, i32
  }
  func.func @transform_1(%arg0: i32) -> (i32, i32) {
    %c0_i32 = arith.constant 0 : i32
    %c0_i32_0 = arith.constant 0 : i32
    return %arg0, %c0_i32 : i32, i32
  }
  func.func @transform_2(%arg0: i32) -> (i32, i32) {
    %c0_i32 = arith.constant 0 : i32
    %c0_i32_0 = arith.constant 0 : i32
    %c0_i32_1 = arith.constant 0 : i32
    return %c0_i32, %c0_i32_0 : i32, i32
  }
  func.func @transform_3(%arg0: i32) -> (i32, i32) {
    %c0_i32 = arith.constant 0 : i32
    %c0_i32_0 = arith.constant 0 : i32
    %c0_i32_1 = arith.constant 0 : i32
    return %c0_i32, %c0_i32_0 : i32, i32
  }
  func.func @transform_4(%arg0: i32) -> (i32, i32) {
    %c0_i32 = arith.constant 0 : i32
    %c0_i32_0 = arith.constant 0 : i32
    %c0_i32_1 = arith.constant 0 : i32
    return %c0_i32, %c0_i32_0 : i32, i32
  }
  func.func @transform_5(%arg0: i32) -> (i32, i32) {
    %c0_i32 = arith.constant 0 : i32
    %c0_i32_0 = arith.constant 0 : i32
    %c0_i32_1 = arith.constant 0 : i32
    return %c0_i32, %c0_i32_0 : i32, i32
  }
  func.func @transform_6(%arg0: i32) -> (i32, i32) {
    %c0_i32 = arith.constant 0 : i32
    %c0_i32_0 = arith.constant 0 : i32
    %c0_i32_1 = arith.constant 0 : i32
    return %c0_i32, %c0_i32_0 : i32, i32
  }
  func.func @transform_7(%arg0: i32) -> (i32, i32) {
    %c0_i32 = arith.constant 0 : i32
    %c0_i32_0 = arith.constant 0 : i32
    %c0_i32_1 = arith.constant 0 : i32
    return %c0_i32, %c0_i32_0 : i32, i32
  }
  func.func @transform_8(%arg0: i32) -> (i32, i32) {
    %c0_i32 = arith.constant 0 : i32
    %c0_i32_0 = arith.constant 0 : i32
    %c0_i32_1 = arith.constant 0 : i32
    return %c0_i32, %c0_i32_0 : i32, i32
  }
  func.func @transform_9(%arg0: i32) -> (i32, i32) {
    %c0_i32 = arith.constant 0 : i32
    %c0_i32_0 = arith.constant 0 : i32
    return %c0_i32, %arg0 : i32, i32
  }
}

</mosaic_0001>

<bundles_post_ra>
// kernel: tpu_custom_call.1
= control target key start
LH: loop header
LB: loop body
LE: loop exit
PB: predicated region body
PF: predicated region fallthrough
CT: control target
= control target key end

     0   :  { %s863_s0 = inlined_call_operand.vmem [shape: f32[8,16], index: 0, kind: input, shape index: {}]   ;;  %s864_s1 = inlined_call_operand.vmem [shape: f32[8,4], index: 1, kind: input, shape index: {}]   ;;  %s865_s2 = inlined_call_operand.vmem [shape: f32[64,16], index: 2, kind: input, shape index: {}]   ;;  %s866_s3 = inlined_call_operand.vmem [shape: f32[64,1], index: 3, kind: input, shape index: {}]   ;;  %s867_s4 = inlined_call_operand.vmem [shape: f32[32,64], index: 4, kind: input, shape index: {}]   ;;  %s868_s5 = inlined_call_operand.vmem [shape: f32[32,4], index: 5, kind: input, shape index: {}]   ;;  %s869_s6 = inlined_call_operand.vmem [shape: f32[32,1], index: 6, kind: input, shape index: {}]   ;;  %s870_s7 = inlined_call_operand.vmem [shape: f32[1,32], index: 7, kind: input, shape index: {}]   ;;  %s871_s8 = inlined_call_operand.<no memory space> [shape: f32[1,1], index: 8, kind: input, shape index: {}]   ;;  %s872_s9 = inlined_call_operand.hbm [shape: f32[1,8], index: 9, kind: output, shape index: {}]  }
   0x1   :  { %v14_v0 = vstv %s871_s8 }
   0x2   :  { %15 = vst [vmem:[#allocation2] sm:$0x1] %v14_v0 }
   0x3   :  { %v50_v1 = vld [vmem:[%s863_s0 + $0x78] sm:$0xff]  ;;  %vm123_vm0 = vcmask 130048   ;;  %v49_v2 = vld [vmem:[%s863_s0 + $0x70] sm:$0xff] }
   0x4   :  { %515 = vmatpush.xpose.msk.msra.mxu3 %vm123_vm0, %v50_v1  ;;  %466 = vmatpush.xpose.msk.msra.mxu0 %vm123_vm0, %v50_v1 }
   0x5   :  { %16 = vsyncpa [#allocation4], 0  ;;  %v48_v3 = vld [vmem:[%s863_s0 + $0x68] sm:$0xff]  ;;  %v47_v4 = vld [vmem:[%s863_s0 + $0x60] sm:$0xff]  ;;  %v562_v14 = vmov 0   ;;  %vm253_vm1 = vcmask 31744  }
   0x6   :  { %v46_v5 = vld [vmem:[%s863_s0 + $0x58] sm:$0xff]  ;;  %v45_v6 = vld [vmem:[%s863_s0 + $0x50] sm:$0xff]  ;;  %v44_v7 = vld [vmem:[%s863_s0 + $0x48] sm:$0xff]  ;;  %533 = vset.pattern.permute.xlu0 %v562_v14  ;;  %534 = vset.pattern.permute.xlu1 %v562_v14  ;;  %vm343_vm2 = vcmask 523264   ;;  %vm425_vm3 = vcmask 261120   ;;  %s563_s10 = smov [#allocation3]  }
   0x7   :  { %v43_v8 = vld [vmem:[%s863_s0 + $0x40] sm:$0xff]  ;;  %v42_v9 = vld [vmem:[%s863_s0 + $0x38] sm:$0xff]  ;;  %v41_v10 = vld [vmem:[%s863_s0 + $0x30] sm:$0xff]  ;;  %535 = vset.pattern.permute.xlu2 %v562_v14  ;;  %s455_s11 = sshll.u32 %s563_s10, 4  ;;  %s456_s11 = int_to_ptr.vmem [resolvable:$true] %s455_s11 }
   0x8   :  { %516 = vmatpush.xpose.msk.msra.mxu3 %vm123_vm0, %v49_v2  ;;  %467 = vmatpush.xpose.msk.msra.mxu0 %vm123_vm0, %v49_v2  ;;  %v40_v11 = vld [vmem:[%s863_s0 + $0x28] sm:$0xff]  ;;  %v82_v12 = vld [vmem:[%s866_s3 + $0x38] sm:$0xff]  ;;  %v39_v13 = vld [vmem:[%s863_s0 + $0x20] sm:$0xff] }
   0x9   :  { %120 = vperm.xlu0 %533, %v82_v12   ;;  %v38_v15 = vld [vmem:[%s863_s0 + $0x18] sm:$0xff]  ;;  %v80_v16 = vld [vmem:[%s866_s3 + $0x28] sm:$0xff]  ;;  %v81_v17 = vld [vmem:[%s866_s3 + $0x30] sm:$0xff] }
   0xa   :  { %v37_v18 = vld [vmem:[%s863_s0 + $0x10] sm:$0xff]  ;;  %110 = vperm.xlu1 %534, %v80_v16   ;;  %v36_v19 = vld [vmem:[%s863_s0 + $0x8] sm:$0xff]  ;;  %v79_v20 = vld [vmem:[%s866_s3 + $0x20] sm:$0xff] }
   0xb   :  { %v76_v21 = vld [vmem:[%s866_s3 + $0x8] sm:$0xff]  ;;  %v35_v22 = vld [vmem:[%s863_s0] sm:$0xff]  ;;  %v70_v23 = vld [vmem:[%s865_s2 + $0x18] sm:$0xff]  ;;  %s457_s0 = sshll.u32 %s872_s9, 4  ;;  %s458_s0 = int_to_ptr.hbm [resolvable:$true] %s457_s0 }
   0xc   :  { %517 = vmatpush.xpose.msk.msra.mxu3 %vm123_vm0, %v48_v3  ;;  %468 = vmatpush.xpose.msk.msra.mxu0 %vm123_vm0, %v48_v3  ;;  %v67_v24 = vld [vmem:[%s865_s2] sm:$0xff]  ;;  %v387_v25 = vld [vmem:[%s869_s6 + $0x10] sm:$0xff]  ;;  %v78_v27 = vld [vmem:[%s866_s3 + $0x18] sm:$0xff] }
   0xd   :  { %v75_v26 = vld [vmem:[%s866_s3] sm:$0xff]  ;;  %100 = vperm.xlu2 %535, %v78_v27   ;;  %v68_v29 = vld [vmem:[%s865_s2 + $0x8] sm:$0xff]  ;;  %v77_v31 = vld [vmem:[%s866_s3 + $0x10] sm:$0xff] }
   0xe   :  { %v71_v28 = vld [vmem:[%s865_s2 + $0x20] sm:$0xff]  ;;  %v386_v30 = vld [vmem:[%s869_s6 + $0x8] sm:$0xff]  ;;  %v69_v34 = vld [vmem:[%s865_s2 + $0x10] sm:$0xff] }
   0xf   :  { %v418_v32 = vld [vmem:[#allocation2] sm:$0x1]  ;;  %v72_v33 = vld [vmem:[%s865_s2 + $0x28] sm:$0xff]  ;;  %v388_v35 = vld [vmem:[%s869_s6 + $0x18] sm:$0xff] }
  0x10   :  { %518 = vmatpush.xpose.msk.msra.mxu3 %vm123_vm0, %v47_v4  ;;  %469 = vmatpush.xpose.msk.msra.mxu0 %vm123_vm0, %v47_v4  ;;  %v73_v36 = vld [vmem:[%s865_s2 + $0x30] sm:$0xff]  ;;  %v385_v37 = vld [vmem:[%s869_s6] sm:$0xff]  ;;  %v74_v38 = vld [vmem:[%s865_s2 + $0x38] sm:$0xff] }
  0x11   :  { %115 = vperm.xlu0 %533, %v81_v17   ;;  %v66_v39 = vld [vmem:[%s864_s1 + $0x78] sm:$0xff]  ;;  %v65_v40 = vld [vmem:[%s864_s1 + $0x70] sm:$0xff]  ;;  %v64_v41 = vld [vmem:[%s864_s1 + $0x68] sm:$0xff] }
  0x12   :  { %105 = vperm.xlu1 %534, %v79_v20   ;;  %490 = vmatpush.xpose.msk.msra.mxu1 %vm253_vm1, %v66_v39  ;;  %v63_v42 = vld [vmem:[%s864_s1 + $0x60] sm:$0xff]  ;;  %v62_v43 = vld [vmem:[%s864_s1 + $0x58] sm:$0xff]  ;;  %v61_v44 = vld [vmem:[%s864_s1 + $0x50] sm:$0xff] }
  0x13   :  { %v60_v45 = vld [vmem:[%s864_s1 + $0x48] sm:$0xff]  ;;  %v59_v46 = vld [vmem:[%s864_s1 + $0x40] sm:$0xff]  ;;  %v58_v47 = vld [vmem:[%s864_s1 + $0x38] sm:$0xff] }
  0x14   :  { %519 = vmatpush.xpose.msk.msra.mxu3 %vm123_vm0, %v46_v5  ;;  %470 = vmatpush.xpose.msk.msra.mxu0 %vm123_vm0, %v46_v5  ;;  %v57_v48 = vld [vmem:[%s864_s1 + $0x30] sm:$0xff]  ;;  %v56_v50 = vld [vmem:[%s864_s1 + $0x28] sm:$0xff]  ;;  %v55_v51 = vld [vmem:[%s864_s1 + $0x20] sm:$0xff] }
  0x15   :  { %95 = vperm.xlu2 %535, %v77_v31   ;;  %v54_v53 = vld [vmem:[%s864_s1 + $0x18] sm:$0xff]  ;;  %v53_v54 = vld [vmem:[%s864_s1 + $0x10] sm:$0xff]  ;;  %v52_v56 = vld [vmem:[%s864_s1 + $0x8] sm:$0xff] }
  0x16   :  { %491 = vmatpush.xpose.msk.msra.mxu1 %vm253_vm1, %v65_v40  ;;  %v51_v58 = vld [vmem:[%s864_s1] sm:$0xff]  ;;  %v250_v1 = vld [vmem:[%s868_s5 + $0x8] sm:$0xff]  ;;  %v251_v14 = vld [vmem:[%s868_s5 + $0x10] sm:$0xff] }
  0x17   :  { %v249_v60 = vld [vmem:[%s868_s5] sm:$0xff] }
  0x18   :  { %520 = vmatpush.xpose.msk.msra.mxu3 %vm123_vm0, %v45_v6  ;;  %471 = vmatpush.xpose.msk.msra.mxu0 %vm123_vm0, %v45_v6  ;;  %v245_v27 = vld [vmem:[%s867_s4] sm:$0xff] }
  0x19   :  { %90 = vperm.xlu0 %533, %v76_v21  }
  0x1a   :  { %85 = vperm.xlu1 %534, %v75_v26   ;;  %492 = vmatpush.xpose.msk.msra.mxu1 %vm253_vm1, %v64_v41 }
  0x1c   :  { %521 = vmatpush.xpose.msk.msra.mxu3 %vm123_vm0, %v44_v7  ;;  %472 = vmatpush.xpose.msk.msra.mxu0 %vm123_vm0, %v44_v7 }
  0x1d   :  { %406 = vperm.xlu2 %535, %v388_v35  }
  0x1e   :  { %493 = vmatpush.xpose.msk.msra.mxu1 %vm253_vm1, %v63_v42 }
  0x20   :  { %522 = vmatpush.xpose.msk.msra.mxu3 %vm123_vm0, %v43_v8  ;;  %473 = vmatpush.xpose.msk.msra.mxu0 %vm123_vm0, %v43_v8 }
  0x21   :  { %401 = vperm.xlu0 %533, %v387_v25   ;;  %v252_v25 = vld [vmem:[%s868_s5 + $0x18] sm:$0xff] }
  0x22   :  { %396 = vperm.xlu1 %534, %v386_v30   ;;  %494 = vmatpush.xpose.msk.msra.mxu1 %vm253_vm1, %v62_v43  ;;  %v248_v30 = vld [vmem:[%s867_s4 + $0x18] sm:$0xff] }
  0x24   :  { %523 = vmatpush.xpose.msk.msra.mxu3 %vm123_vm0, %v42_v9  ;;  %474 = vmatpush.xpose.msk.msra.mxu0 %vm123_vm0, %v42_v9 }
  0x25   :  { %391 = vperm.xlu2 %535, %v385_v37  }
  0x26   :  { %495 = vmatpush.xpose.msk.msra.mxu1 %vm253_vm1, %v61_v44 }
  0x28   :  { %524 = vmatpush.xpose.msk.msra.mxu3 %vm123_vm0, %v41_v10  ;;  %475 = vmatpush.xpose.msk.msra.mxu0 %vm123_vm0, %v41_v10 }
  0x29   :  { %421 = vperm.xlu0 %533, %v418_v32  }
  0x2a   :  { %496 = vmatpush.xpose.msk.msra.mxu1 %vm253_vm1, %v60_v45 }
  0x2c   :  { %525 = vmatpush.xpose.msk.msra.mxu3 %vm123_vm0, %v40_v11  ;;  %476 = vmatpush.xpose.msk.msra.mxu0 %vm123_vm0, %v40_v11 }
  0x2e   :  { %497 = vmatpush.xpose.msk.msra.mxu1 %vm253_vm1, %v59_v46 }
  0x30   :  { %526 = vmatpush.xpose.msk.msra.mxu3 %vm123_vm0, %v39_v13  ;;  %477 = vmatpush.xpose.msk.msra.mxu0 %vm123_vm0, %v39_v13 }
  0x32   :  { %498 = vmatpush.xpose.msk.msra.mxu1 %vm253_vm1, %v58_v47 }
  0x34   :  { %527 = vmatpush.xpose.msk.msra.mxu3 %vm123_vm0, %v38_v15  ;;  %478 = vmatpush.xpose.msk.msra.mxu0 %vm123_vm0, %v38_v15 }
  0x36   :  { %499 = vmatpush.xpose.msk.msra.mxu1 %vm253_vm1, %v57_v48 }
  0x38   :  { %528 = vmatpush.xpose.msk.msra.mxu3 %vm123_vm0, %v37_v18  ;;  %479 = vmatpush.xpose.msk.msra.mxu0 %vm123_vm0, %v37_v18 }
  0x3a   :  { %500 = vmatpush.xpose.msk.msra.mxu1 %vm253_vm1, %v56_v50 }
  0x3c   :  { %529 = vmatpush.xpose.msk.msra.mxu3 %vm123_vm0, %v36_v19  ;;  %480 = vmatpush.xpose.msk.msra.mxu0 %vm123_vm0, %v36_v19 }
  0x3e   :  { %501 = vmatpush.xpose.msk.msra.mxu1 %vm253_vm1, %v55_v51 }
  0x40   :  { %530 = vmatpush.xpose.msk.msra.mxu3 %vm123_vm0, %v35_v22  ;;  %481 = vmatpush.xpose.msk.msra.mxu0 %vm123_vm0, %v35_v22 }
  0x42   :  { %502 = vmatpush.xpose.msk.msra.mxu1 %vm253_vm1, %v54_v53 }
  0x43   :  { %485 = vmatmul.msk.f32.vlgmr.msra.gmra.mxu3 %vm123_vm0, %v70_v23  ;;  %482 = vmatmul.msk.f32.vlgmr.msra.gmra.mxu0 %vm123_vm0, %v67_v24 }
  0x46   :  { %503 = vmatpush.xpose.msk.msra.mxu1 %vm253_vm1, %v53_v54 }
  0x4a   :  { %504 = vmatpush.xpose.msk.msra.mxu1 %vm253_vm1, %v52_v56 }
  0x4b   :  { %486 = vmatmul.msk.f32.gmra.mxu3 %vm123_vm0, %v71_v28  ;;  %483 = vmatmul.msk.f32.gmra.mxu0 %vm123_vm0, %v68_v29  ;;  %v246_v28 = vld [vmem:[%s867_s4 + $0x8] sm:$0xff]  ;;  %v247_v29 = vld [vmem:[%s867_s4 + $0x10] sm:$0xff] }
  0x4e   :  { %505 = vmatpush.xpose.msk.msra.mxu1 %vm253_vm1, %v51_v58 }
  0x51   :  { %506 = vmatmul.msk.f32.vlgmr.msra.gmra.mxu1 %vm253_vm1, %v249_v60 }
  0x53   :  { %487 = vmatmul.msk.f32.gmra.mxu3 %vm123_vm0, %v72_v33  ;;  %484 = vmatmul.msk.f32.gmra.mxu0 %vm123_vm0, %v69_v34 }
  0x59   :  { %507 = vmatmul.msk.f32.gmra.mxu1 %vm253_vm1, %v250_v1 }
  0x5b   :  { %488 = vmatmul.msk.f32.gmra.mxu3 %vm123_vm0, %v73_v36 }
  0x61   :  { %508 = vmatmul.msk.f32.gmra.mxu1 %vm253_vm1, %v251_v14 }
  0x63   :  { %489 = vmatmul.msk.f32.gmra.mxu3 %vm123_vm0, %v74_v38 }
  0x67   :  { %v101_v0 = vpop.permute.xlu2 %100 }
  0x69   :  { %509 = vmatmul.msk.f32.gmra.mxu1 %vm253_vm1, %v252_v25 }
  0x6f   :  { %v96_v15 = vpop.permute.xlu2 %95 }
  0x77   :  { %v407_v37 = vpop.permute.xlu2 %406 }
  0x7b   :  { %v121_v59 = vpop.permute.xlu0 %120 }
  0x7c   :  { %v111_v61 = vpop.permute.xlu1 %110 }
  0x7f   :  { %v392_v50 = vpop.permute.xlu2 %391 }
  0x83   :  { %v116_v2 = vpop.permute.xlu0 %115 }
  0x84   :  { %v106_v6 = vpop.permute.xlu1 %105 }
  0x8b   :  { %v91_v18 = vpop.permute.xlu0 %90 }
  0x8c   :  { %v86_v21 = vpop.permute.xlu1 %85 }
  0x93   :  { %v402_v43 = vpop.permute.xlu0 %401 }
  0x94   :  { %v397_v47 = vpop.permute.xlu1 %396 }
  0x9b   :  { %v422_v56 = vpop.permute.xlu0 %421 }
  0xc0   :  { %v213_v57 = vpop.f32.mrf.mxu0 }
  0xc1   :  { %v214_v22 = vadd.f32 %v213_v57, %v86_v21  ;;  %v424_v57 = vperm.slane %v422_v56, 0 }
  0xc3   :  { %v237_v26 = vmax.f32 %v214_v22, 0.0 }
  0xc6   :  { %v222_v49 = vpop.f32.mrf.mxu3 }
  0xc7   :  { %v223_v12 = vadd.f32 %v222_v49, %v101_v0 }
  0xc8   :  { %v216_v63 = vpop.f32.mrf.mxu0 }
  0xc9   :  { %v240_v19 = vmax.f32 %v223_v12, 0.0  ;;  %v217_v20 = vadd.f32 %v216_v63, %v91_v18 }
  0xcb   :  { %v238_v24 = vmax.f32 %v217_v20, 0.0 }
  0xce   :  { %v225_v52 = vpop.f32.mrf.mxu3  ;;  %v331_v31 = vpop.f32.mrf.mxu1 }
  0xcf   :  { %v226_v9 = vadd.f32 %v225_v52, %v106_v6 }
  0xd0   :  { %v219_v11 = vpop.f32.mrf.mxu0 }
  0xd1   :  { %v241_v16 = vmax.f32 %v226_v9, 0.0  ;;  %v220_v17 = vadd.f32 %v219_v11, %v96_v15 }
  0xd3   :  { %v239_v23 = vmax.f32 %v220_v17, 0.0 }
  0xd6   :  { %v228_v55 = vpop.f32.mrf.mxu3  ;;  %v334_v33 = vpop.f32.mrf.mxu1 }
  0xd7   :  { %v229_v7 = vadd.f32 %v228_v55, %v111_v61  ;;  %v417_v55 = vld [vmem:[%s870_s7] sm:$0x1] }
  0xd9   :  { %v242_v13 = vmax.f32 %v229_v7, 0.0 }
  0xde   :  { %v231_v62 = vpop.f32.mrf.mxu3  ;;  %v337_v35 = vpop.f32.mrf.mxu1 }
  0xdf   :  { %v232_v4 = vadd.f32 %v231_v62, %v116_v2 }
  0xe1   :  { %v243_v10 = vmax.f32 %v232_v4, 0.0 }
  0xe6   :  { %v234_v3 = vpop.f32.mrf.mxu3  ;;  %v340_v38 = vpop.f32.mrf.mxu1 }
  0xe7   :  { %v235_v5 = vadd.f32 %v234_v3, %v121_v59 }
  0xe9   :  { %v244_v8 = vmax.f32 %v235_v5, 0.0 }
  0xeb   :  { %364 = vmatpush.msra.mxu2 %v244_v8 }
  0xed   :  { %365 = vmatpush.msra.mxu2 %v243_v10 }
  0xef   :  { %366 = vmatpush.msra.mxu2 %v242_v13 }
  0xf1   :  { %367 = vmatpush.msra.mxu2 %v241_v16 }
  0xf3   :  { %368 = vmatpush.msra.mxu2 %v240_v19 }
  0xf5   :  { %369 = vmatpush.msra.mxu2 %v239_v23 }
  0xf7   :  { %370 = vmatpush.msra.mxu2 %v238_v24 }
  0xf9   :  { %371 = vmatpush.msra.mxu2 %v237_v26 }
  0xfa   :  { %510 = vmatmul.msk.f32.vlgmr.msra.gmra.mxu2 %vm343_vm2, %v245_v27 }
 0x102   :  { %511 = vmatmul.msk.f32.gmra.mxu2 %vm343_vm2, %v246_v28 }
 0x10a   :  { %512 = vmatmul.msk.f32.gmra.mxu2 %vm343_vm2, %v247_v29 }
 0x112   :  { %513 = vmatmul.msk.f32.gmra.mxu2 %vm343_vm2, %v248_v30 }
 0x17d   :  { %v373_v32 = vpop.f32.mrf.mxu2 }
 0x17e   :  { %v374_v44 = vadd.f32 %v373_v32, %v331_v31 }
 0x180   :  { %v409_v52 = vadd.f32 %v392_v50, %v374_v44 }
 0x182   :  { %v413_v54 = vmax.f32 %v409_v52, 0.0 }
 0x185   :  { %v376_v34 = vpop.f32.mrf.mxu2 }
 0x186   :  { %v377_v41 = vadd.f32 %v376_v34, %v334_v33 }
 0x188   :  { %v410_v49 = vadd.f32 %v397_v47, %v377_v41 }
 0x18a   :  { %v414_v53 = vmax.f32 %v410_v49, 0.0 }
 0x18d   :  { %v379_v36 = vpop.f32.mrf.mxu2 }
 0x18e   :  { %v380_v39 = vadd.f32 %v379_v36, %v337_v35 }
 0x190   :  { %v411_v46 = vadd.f32 %v402_v43, %v380_v39 }
 0x192   :  { %v415_v51 = vmax.f32 %v411_v46, 0.0 }
 0x195   :  { %v382_v40 = vpop.f32.mrf.mxu2 }
 0x196   :  { %v383_v42 = vadd.f32 %v382_v40, %v340_v38 }
 0x198   :  { %v412_v45 = vadd.f32 %v407_v37, %v383_v42 }
 0x19a   :  { %v416_v48 = vmax.f32 %v412_v45, 0.0 }
 0x19c   :  { %441 = vmatpush.msrb.mxu2 %v416_v48 }
 0x19e   :  { %442 = vmatpush.msrb.mxu2 %v415_v51 }
 0x1a0   :  { %443 = vmatpush.msrb.mxu2 %v414_v53 }
 0x1a2   :  { %444 = vmatpush.msrb.mxu2 %v413_v54 }
 0x1a3   :  { %514 = vmatmul.msk.f32.vlgmr.msrb.gmra.mxu2 %vm425_vm3, %v417_v55 }
 0x226   :  { %v446_v58 = vpop.f32.mrf.mxu2 }
 0x227   :  { %v447_v59 = vadd.f32 %v446_v58, %v424_v57 }
 0x229   :  { %449 = vst [vmem:[#allocation3] sm:$0x1] %v447_v59 }
 0x22a   :  { %460 = dma.vmem_to_hbm [thread:$0]  %s456_s11, 16, %s458_s0, [#allocation4]  }
 0x22b   :  { %560 = dma.done.wait [#allocation4], 16  }
 0x22c   :  { %561 = vsyncadd [#allocation4], 4294967280 }
 0x22d   :  { %465 = vsyncpa [#allocation4], 1 }

</bundles_post_ra>
